<compile_context>
chip_gen: v7x
topology: tpu7x:2x2x1
jax: 0.10.0
libtpu: 0.0.40
codegen_flags: <defaults>
</compile_context>

<pallas_src>
import jax
import jax.numpy as jnp
from jax.experimental import pallas as pl
from jax.experimental.pallas import tpu as pltpu

STATE_SIZE = 24
ACTION_SIZE = 8
IN_DIM = STATE_SIZE + ACTION_SIZE   # 32
HIDDEN = 256


def _round_up(x, m):
    return ((x + m - 1) // m) * m


def _critic_kernel(sa_ref, w14_ref, b14_ref, w25_ref, b25_ref,
                   w36_ref, b36_ref, q_ref):
    sa = sa_ref[...].astype(jnp.bfloat16)               # (TB, 32)

    # Fused layer 1 for both branches: one K=32 matmul -> (TB, 512) f32.
    h = (jnp.dot(sa, w14_ref[...], preferred_element_type=jnp.float32)
         + b14_ref[...])
    h = jnp.maximum(h, 0.0)
    hb = h.astype(jnp.bfloat16)                          # cast once, then slice
    h1 = hb[:, :HIDDEN]                                  # (TB, 256) branch 1
    h2 = hb[:, HIDDEN:]                                  # (TB, 256) branch 2

    # Layer 2: the two real 256x256 MXU matmuls (slices of the fused weight).
    g1 = jnp.maximum(
        jnp.dot(h1, w25_ref[:, :HIDDEN], preferred_element_type=jnp.float32)
        + b25_ref[:, :HIDDEN], 0.0)
    g2 = jnp.maximum(
        jnp.dot(h2, w25_ref[:, HIDDEN:], preferred_element_type=jnp.float32)
        + b25_ref[:, HIDDEN:], 0.0)

    # Heads (256 -> 1) off the MXU: VPU multiply + lane reduce (XLU slack).
    q1 = jnp.sum(g1 * w36_ref[0:1, :], axis=-1, keepdims=True)   # (TB, 1)
    q2 = jnp.sum(g2 * w36_ref[1:2, :], axis=-1, keepdims=True)   # (TB, 1)

    # Single (TB, 2) store per tile: column 0 = q1, column 1 = q2.
    col = jax.lax.broadcasted_iota(jnp.int32, (q_ref.shape[0], 2), 1)
    q_ref[...] = jnp.where(col == 0, q1, q2) + b36_ref[...]


def prepare_params(params):
    """One-time fusion + bf16 cast of the raw f32 parameters.

    params: dict with w1..w6 stored as (in, out) and b1..b6 as (1, out), f32.
    """
    w14 = jnp.concatenate([params["w1"], params["w4"]], axis=1)    # (32, 512)
    b14 = jnp.concatenate([params["b1"], params["b4"]], axis=1)    # (1, 512)
    w25 = jnp.concatenate([params["w2"], params["w5"]], axis=1)    # (256, 512)
    b25 = jnp.concatenate([params["b2"], params["b5"]], axis=1)    # (1, 512)
    w36 = jnp.concatenate([params["w3"].T, params["w6"].T], axis=0)  # (2, 256)
    b36 = jnp.concatenate([params["b3"], params["b6"]], axis=1)    # (1, 2)
    return {
        "w14": w14.astype(jnp.bfloat16),
        "b14": b14.astype(jnp.float32),
        "w25": w25.astype(jnp.bfloat16),
        "b25": b25.astype(jnp.float32),
        "w36": w36.astype(jnp.float32),   # head weights stay f32 (VPU path)
        "b36": b36.astype(jnp.float32),
    }


def critic_td_forward(state, action, prepared, *, block_b=1024):
    """Returns (q1, q2), each (B, 1) float32.

    block_b: batch tile size.  Default 1024 amortizes per-grid-step overhead;
    vmem_limit_bytes=32 MiB below covers tiles up to ~2048 on every chip
    (raise it further if you push block_b past that).
    """
    sa = jnp.concatenate([state.astype(jnp.float32),
                          action.astype(jnp.float32)], axis=1)     # (B, 32)
    B = sa.shape[0]

    B8 = _round_up(B, 8)
    # Prefer a >=2-tile grid so v7x's two TensorCores both get work
    # (no-op on v5e/v6e); never tile larger than the (padded) batch.
    tb_cap = _round_up(pl.cdiv(B8, 2), 8) if B8 >= 16 else B8
    TB = _round_up(min(block_b, tb_cap), 8)
    Bp = _round_up(B, TB)
    if Bp != B:
        sa = jnp.pad(sa, ((0, Bp - B), (0, 0)))

    p = prepared
    weights = (p["w14"], p["b14"], p["w25"], p["b25"], p["w36"], p["b36"])

    def _invariant(arr):
        # Grid-invariant block: whole array resident in VMEM across tiles.
        return pl.BlockSpec(arr.shape, lambda i: (0, 0))

    in_specs = ([pl.BlockSpec((TB, IN_DIM), lambda i: (i, 0))]
                + [_invariant(w) for w in weights])

    flops = 2 * Bp * (IN_DIM * 2 * HIDDEN + 2 * HIDDEN * HIDDEN + 2 * HIDDEN)
    weight_bytes = sum(int(w.size) * w.dtype.itemsize for w in weights)
    bytes_accessed = (weight_bytes
                      + Bp * IN_DIM * 4      # packed input
                      + Bp * 2 * 4)          # merged output

    out = pl.pallas_call(
        _critic_kernel,
        out_shape=jax.ShapeDtypeStruct((Bp, 2), jnp.float32),
        grid=(Bp // TB,),
        in_specs=in_specs,
        out_specs=pl.BlockSpec((TB, 2), lambda i: (i, 0)),
        compiler_params=pltpu.CompilerParams(
            dimension_semantics=("parallel",),
            vmem_limit_bytes=32 * 1024 * 1024),
        cost_estimate=pl.CostEstimate(
            flops=flops, transcendentals=0, bytes_accessed=bytes_accessed),
    )(sa, *weights)

    q = out[:B]
    return q[:, 0:1], q[:, 1:2]


def init_params(key):
    """Deterministic synthetic parameters (PyTorch-style init, pre-transposed)."""
    dims = [(IN_DIM, HIDDEN), (HIDDEN, HIDDEN), (HIDDEN, 1),
            (IN_DIM, HIDDEN), (HIDDEN, HIDDEN), (HIDDEN, 1)]
    params = {}
    for idx, (din, dout) in enumerate(dims, start=1):
        key, kw, kb = jax.random.split(key, 3)
        bound = 1.0 / jnp.sqrt(jnp.float32(din))
        # weight stored as (in, out) == W.T of PyTorch's (out, in)
        params[f"w{idx}"] = jax.random.uniform(
            kw, (din, dout), jnp.float32, minval=-bound, maxval=bound)
        params[f"b{idx}"] = jax.random.uniform(
            kb, (1, dout), jnp.float32, minval=-bound, maxval=bound)
    return params


def reference_forward(state, action, params):
    sa = jnp.concatenate([state, action], axis=1)

    def branch(wa, ba, wb, bb, wc, bc):
        h = jnp.maximum(sa @ wa + ba, 0.0)
        h = jnp.maximum(h @ wb + bb, 0.0)
        return h @ wc + bc

    q1 = branch(params["w1"], params["b1"], params["w2"], params["b2"],
                params["w3"], params["b3"])
    q2 = branch(params["w4"], params["b4"], params["w5"], params["b5"],
                params["w6"], params["b6"])
    return q1, q2


if __name__ == "__main__":
    key = jax.random.PRNGKey(0)
    kp, ks, ka = jax.random.split(key, 3)

    params = init_params(kp)
    prepared = prepare_params(params)

    # --- Test 1: small batch, single tile ---
    B = 8
    state = jax.random.normal(ks, (B, STATE_SIZE), jnp.float32)
    action = jax.random.normal(ka, (B, ACTION_SIZE), jnp.float32)

    q1, q2 = critic_td_forward(state, action, prepared)
    q1 = jax.block_until_ready(q1)
    q2 = jax.block_until_ready(q2)

    r1, r2 = reference_forward(state, action, params)
    assert q1.shape == (B, 1) and q2.shape == (B, 1)
    # bf16 matmul weights/activations vs f32 reference -> loosened tolerance.
    assert jnp.allclose(q1, r1, atol=2e-2, rtol=2e-2), \
        float(jnp.max(jnp.abs(q1 - r1)))
    assert jnp.allclose(q2, r2, atol=2e-2, rtol=2e-2), \
        float(jnp.max(jnp.abs(q2 - r2)))

    # --- Test 2: non-multiple-of-tile batch, small tile (multi-tile + padding) ---
    B2 = 50
    ks2, ka2 = jax.random.split(jax.random.PRNGKey(1))
    state2 = jax.random.normal(ks2, (B2, STATE_SIZE), jnp.float32)
    action2 = jax.random.normal(ka2, (B2, ACTION_SIZE), jnp.float32)

    q1b, q2b = critic_td_forward(state2, action2, prepared, block_b=16)
    q1b = jax.block_until_ready(q1b)
    q2b = jax.block_until_ready(q2b)

    r1b, r2b = reference_forward(state2, action2, params)
    assert q1b.shape == (B2, 1) and q2b.shape == (B2, 1)
    assert jnp.allclose(q1b, r1b, atol=2e-2, rtol=2e-2)
    assert jnp.allclose(q2b, r2b, atol=2e-2, rtol=2e-2)

    # --- Test 3: default tile path (>=2-tile split + padding) ---
    B3 = 300
    ks3, ka3 = jax.random.split(jax.random.PRNGKey(2))
    state3 = jax.random.normal(ks3, (B3, STATE_SIZE), jnp.float32)
    action3 = jax.random.normal(ka3, (B3, ACTION_SIZE), jnp.float32)

    q1c, q2c = critic_td_forward(state3, action3, prepared)
    q1c = jax.block_until_ready(q1c)
    q2c = jax.block_until_ready(q2c)

    r1c, r2c = reference_forward(state3, action3, params)
    assert q1c.shape == (B3, 1) and q2c.shape == (B3, 1)
    assert jnp.allclose(q1c, r1c, atol=2e-2, rtol=2e-2)
    assert jnp.allclose(q2c, r2c, atol=2e-2, rtol=2e-2)

    print("KERNEL_OK")
</pallas_src>

<mosaic_0001>
module attributes {stable_mosaic.version = 11 : i64} {
  func.func @_critic_kernel(%arg0: i32, %arg1: memref<8x32xf32, #tpu.memory_space<vmem>>, %arg2: memref<32x512xbf16, #tpu.memory_space<vmem>>, %arg3: memref<1x512xf32, #tpu.memory_space<vmem>>, %arg4: memref<256x512xbf16, #tpu.memory_space<vmem>>, %arg5: memref<1x512xf32, #tpu.memory_space<vmem>>, %arg6: memref<2x256xf32, #tpu.memory_space<vmem>>, %arg7: memref<1x2xf32, #tpu.memory_space<vmem>>, %arg8: memref<8x2xf32, #tpu.memory_space<vmem>>) attributes {dimension_semantics = [#tpu.dimension_semantics<parallel>], iteration_bounds = array<i64: 1>, scalar_prefetch = 0 : i64, scratch_operands = 0 : i64, tpu.core_type = #tpu.core_type<tc>, window_params = [{transform_indices = @transform_0, window_bounds = array<i64: 8, 32>}, {pipeline_mode = #tpu.pipeline_mode<synchronous>, transform_indices = @transform_1, window_bounds = array<i64: 32, 512>}, {pipeline_mode = #tpu.pipeline_mode<synchronous>, transform_indices = @transform_2, window_bounds = array<i64: 1, 512>}, {pipeline_mode = #tpu.pipeline_mode<synchronous>, transform_indices = @transform_3, window_bounds = array<i64: 256, 512>}, {pipeline_mode = #tpu.pipeline_mode<synchronous>, transform_indices = @transform_4, window_bounds = array<i64: 1, 512>}, {pipeline_mode = #tpu.pipeline_mode<synchronous>, transform_indices = @transform_5, window_bounds = array<i64: 2, 256>}, {pipeline_mode = #tpu.pipeline_mode<synchronous>, transform_indices = @transform_6, window_bounds = array<i64: 1, 2>}, {transform_indices = @transform_7, window_bounds = array<i64: 8, 2>}]} {
    %c0 = arith.constant 0 : index
    %c0_0 = arith.constant 0 : index
    %0 = vector.load %arg1[%c0, %c0_0] : memref<8x32xf32, #tpu.memory_space<vmem>>, vector<8x32xf32>
    %1 = arith.truncf %0 : vector<8x32xf32> to vector<8x32xbf16>
    %c0_1 = arith.constant 0 : index
    %c0_2 = arith.constant 0 : index
    %2 = vector.load %arg2[%c0_1, %c0_2] : memref<32x512xbf16, #tpu.memory_space<vmem>>, vector<32x512xbf16>
    %cst = arith.constant dense<0.000000e+00> : vector<8x512xf32>
    %3 = tpu.matmul %1, %2, %cst {dimension_numbers = #tpu.dot_dimension_numbers<[1], [0], [0], [1], [0, 0, 1, 1], [], []>} : vector<8x32xbf16>, vector<32x512xbf16>, vector<8x512xf32> -> vector<8x512xf32>
    %c0_3 = arith.constant 0 : index
    %c0_4 = arith.constant 0 : index
    %4 = vector.load %arg3[%c0_3, %c0_4] : memref<1x512xf32, #tpu.memory_space<vmem>>, vector<1x512xf32>
    %5 = vector.broadcast %4 : vector<1x512xf32> to vector<8x512xf32>
    %6 = arith.addf %3, %5 : vector<8x512xf32>
    %cst_5 = arith.constant 0.000000e+00 : f32
    %7 = vector.broadcast %cst_5 : f32 to vector<8x512xf32>
    %8 = arith.maximumf %6, %7 : vector<8x512xf32>
    %9 = arith.truncf %8 : vector<8x512xf32> to vector<8x512xbf16>
    %10 = vector.extract_strided_slice %9 {offsets = [0, 0], sizes = [8, 256], strides = [1, 1]} : vector<8x512xbf16> to vector<8x256xbf16>
    %11 = vector.extract_strided_slice %9 {offsets = [0, 256], sizes = [8, 256], strides = [1, 1]} : vector<8x512xbf16> to vector<8x256xbf16>
    %c0_6 = arith.constant 0 : index
    %c0_7 = arith.constant 0 : index
    %12 = vector.load %arg4[%c0_6, %c0_7] : memref<256x512xbf16, #tpu.memory_space<vmem>>, vector<256x256xbf16>
    %cst_8 = arith.constant dense<0.000000e+00> : vector<8x256xf32>
    %13 = tpu.matmul %10, %12, %cst_8 {dimension_numbers = #tpu.dot_dimension_numbers<[1], [0], [0], [1], [0, 0, 1, 1], [], []>} : vector<8x256xbf16>, vector<256x256xbf16>, vector<8x256xf32> -> vector<8x256xf32>
    %c0_9 = arith.constant 0 : index
    %c0_10 = arith.constant 0 : index
    %14 = vector.load %arg5[%c0_9, %c0_10] : memref<1x512xf32, #tpu.memory_space<vmem>>, vector<1x256xf32>
    %15 = vector.broadcast %14 : vector<1x256xf32> to vector<8x256xf32>
    %16 = arith.addf %13, %15 : vector<8x256xf32>
    %cst_11 = arith.constant 0.000000e+00 : f32
    %17 = vector.broadcast %cst_11 : f32 to vector<8x256xf32>
    %18 = arith.maximumf %16, %17 : vector<8x256xf32>
    %c0_12 = arith.constant 0 : index
    %c256 = arith.constant 256 : index
    %19 = vector.load %arg4[%c0_12, %c256] : memref<256x512xbf16, #tpu.memory_space<vmem>>, vector<256x256xbf16>
    %cst_13 = arith.constant dense<0.000000e+00> : vector<8x256xf32>
    %20 = tpu.matmul %11, %19, %cst_13 {dimension_numbers = #tpu.dot_dimension_numbers<[1], [0], [0], [1], [0, 0, 1, 1], [], []>} : vector<8x256xbf16>, vector<256x256xbf16>, vector<8x256xf32> -> vector<8x256xf32>
    %c0_14 = arith.constant 0 : index
    %c256_15 = arith.constant 256 : index
    %21 = vector.load %arg5[%c0_14, %c256_15] : memref<1x512xf32, #tpu.memory_space<vmem>>, vector<1x256xf32>
    %22 = vector.broadcast %21 : vector<1x256xf32> to vector<8x256xf32>
    %23 = arith.addf %20, %22 : vector<8x256xf32>
    %cst_16 = arith.constant 0.000000e+00 : f32
    %24 = vector.broadcast %cst_16 : f32 to vector<8x256xf32>
    %25 = arith.maximumf %23, %24 : vector<8x256xf32>
    %c0_17 = arith.constant 0 : index
    %c0_18 = arith.constant 0 : index
    %26 = vector.load %arg6[%c0_17, %c0_18] : memref<2x256xf32, #tpu.memory_space<vmem>>, vector<1x256xf32>
    %27 = vector.broadcast %26 : vector<1x256xf32> to vector<8x256xf32>
    %28 = arith.mulf %18, %27 : vector<8x256xf32>
    %cst_19 = arith.constant dense<0.000000e+00> : vector<8xf32>
    %29 = vector.multi_reduction <add>, %28, %cst_19 [1] : vector<8x256xf32> to vector<8xf32>
    %30 = vector.shape_cast %29 : vector<8xf32> to vector<8x1xf32>
    %c1 = arith.constant 1 : index
    %c0_20 = arith.constant 0 : index
    %31 = vector.load %arg6[%c1, %c0_20] : memref<2x256xf32, #tpu.memory_space<vmem>>, vector<1x256xf32>
    %32 = vector.broadcast %31 : vector<1x256xf32> to vector<8x256xf32>
    %33 = arith.mulf %25, %32 : vector<8x256xf32>
    %cst_21 = arith.constant dense<0.000000e+00> : vector<8xf32>
    %34 = vector.multi_reduction <add>, %33, %cst_21 [1] : vector<8x256xf32> to vector<8xf32>
    %35 = vector.shape_cast %34 : vector<8xf32> to vector<8x1xf32>
    %36 = tpu.iota {dimensions = array<i32: 1>} : vector<8x2xi32>
    %c0_i32 = arith.constant 0 : i32
    %37 = vector.broadcast %c0_i32 : i32 to vector<8x2xi32>
    %38 = arith.cmpi eq, %36, %37 : vector<8x2xi32>
    %39 = vector.shape_cast %30 : vector<8x1xf32> to vector<8x1xf32>
    %40 = vector.broadcast %39 : vector<8x1xf32> to vector<8x2xf32>
    %41 = vector.shape_cast %35 : vector<8x1xf32> to vector<8x1xf32>
    %42 = vector.broadcast %41 : vector<8x1xf32> to vector<8x2xf32>
    %43 = arith.select %38, %40, %42 : vector<8x2xi1>, vector<8x2xf32>
    %c0_22 = arith.constant 0 : index
    %c0_23 = arith.constant 0 : index
    %44 = vector.load %arg7[%c0_22, %c0_23] : memref<1x2xf32, #tpu.memory_space<vmem>>, vector<1x2xf32>
    %45 = vector.broadcast %44 : vector<1x2xf32> to vector<8x2xf32>
    %46 = arith.addf %43, %45 : vector<8x2xf32>
    %c0_24 = arith.constant 0 : index
    %c0_25 = arith.constant 0 : index
    %47 = vector.load %arg8[%c0_24, %c0_25] : memref<8x2xf32, #tpu.memory_space<vmem>>, vector<8x2xf32>
    tpu.vector_store %arg8[%c0_24, %c0_25], %46 {strides = array<i32>} : memref<8x2xf32, #tpu.memory_space<vmem>>, vector<8x2xf32>,
    return
  }
  func.func @transform_0(%arg0: i32) -> (i32, i32) {
    %c0_i32 = arith.constant 0 : i32
    %c0_i32_0 = arith.constant 0 : i32
    return %arg0, %c0_i32 : i32, i32
  }
  func.func @transform_1(%arg0: i32) -> (i32, i32) {
    %c0_i32 = arith.constant 0 : i32
    %c0_i32_0 = arith.constant 0 : i32
    %c0_i32_1 = arith.constant 0 : i32
    return %c0_i32, %c0_i32_0 : i32, i32
  }
  func.func @transform_2(%arg0: i32) -> (i32, i32) {
    %c0_i32 = arith.constant 0 : i32
    %c0_i32_0 = arith.constant 0 : i32
    %c0_i32_1 = arith.constant 0 : i32
    return %c0_i32, %c0_i32_0 : i32, i32
  }
  func.func @transform_3(%arg0: i32) -> (i32, i32) {
    %c0_i32 = arith.constant 0 : i32
    %c0_i32_0 = arith.constant 0 : i32
    %c0_i32_1 = arith.constant 0 : i32
    return %c0_i32, %c0_i32_0 : i32, i32
  }
  func.func @transform_4(%arg0: i32) -> (i32, i32) {
    %c0_i32 = arith.constant 0 : i32
    %c0_i32_0 = arith.constant 0 : i32
    %c0_i32_1 = arith.constant 0 : i32
    return %c0_i32, %c0_i32_0 : i32, i32
  }
  func.func @transform_5(%arg0: i32) -> (i32, i32) {
    %c0_i32 = arith.constant 0 : i32
    %c0_i32_0 = arith.constant 0 : i32
    %c0_i32_1 = arith.constant 0 : i32
    return %c0_i32, %c0_i32_0 : i32, i32
  }
  func.func @transform_6(%arg0: i32) -> (i32, i32) {
    %c0_i32 = arith.constant 0 : i32
    %c0_i32_0 = arith.constant 0 : i32
    %c0_i32_1 = arith.constant 0 : i32
    return %c0_i32, %c0_i32_0 : i32, i32
  }
  func.func @transform_7(%arg0: i32) -> (i32, i32) {
    %c0_i32 = arith.constant 0 : i32
    %c0_i32_0 = arith.constant 0 : i32
    return %arg0, %c0_i32 : i32, i32
  }
}

</mosaic_0001>

<bundles_post_ra>
// kernel: tpu_custom_call.1
= control target key start
LH: loop header
LB: loop body
LE: loop exit
PB: predicated region body
PF: predicated region fallthrough
CT: control target
= control target key end

     0   :  { %12 = vsyncpa [#allocation3], 0  ;;  %s1159_s0 = inlined_call_operand.hbm [shape: f32[8,32], index: 0, kind: input, shape index: {}]   ;;  %s1160_s1 = inlined_call_operand.hbm [shape: bf16[32,512], index: 1, kind: input, shape index: {}]   ;;  %s1161_s2 = inlined_call_operand.vmem [shape: f32[1,512], index: 2, kind: input, shape index: {}]   ;;  %s1162_s3 = inlined_call_operand.hbm [shape: bf16[256,512], index: 3, kind: input, shape index: {}]   ;;  %s1163_s4 = inlined_call_operand.vmem [shape: f32[1,512], index: 4, kind: input, shape index: {}]   ;;  %s1164_s5 = inlined_call_operand.vmem [shape: f32[2,256], index: 5, kind: input, shape index: {}]   ;;  %s1165_s6 = inlined_call_operand.vmem [shape: f32[1,2], index: 6, kind: input, shape index: {}]   ;;  %s1166_s7 = inlined_call_operand.vmem [shape: f32[8,2], index: 7, kind: output, shape index: {}]  }
   0x1   :  { %13 = vsyncpa [#allocation5], 0  ;;  %s1041_s24 = smov [#allocation4]   ;;  %s971_s28 = scalar_lea.hbm %s1160_s1, 1024 }
   0x2   :  { %s29_s25 = sshll.u32 %s1041_s24, 4  ;;  %p972_p0 = scmp.ne.s32.totalorder %s1160_s1, %s971_s28  ;;  %s30_s25 = int_to_ptr.vmem [resolvable:$true] %s29_s25 }
   0x3   :  { %p975_p1 = scmp.lt.u32.totalorder %s971_s28, %s1160_s1 }
   0x5   :  { %p977_p2 = pnand %p975_p1, %p972_p0 }
   0x7   :  { %980 = shalt.err (!%p977_p2)
}
   0x8   :  { %s981_s10 = scalar_lea.vmem %s30_s25, 1024  ;;  %p986_p4 = scmp.lt.s32.totalorder %s30_s25, %s30_s25 }
   0x9   :  { %p982_p3 = scmp.ne.s32.totalorder %s30_s25, %s981_s10  ;;  %p987_p5 = scmp.lt.s32.totalorder %s981_s10, %s981_s10 }
   0xb   :  { %p988_p6 = por %p987_p5, %p986_p4 }
   0xd   :  { %p989_p7 = pnand %p988_p6, %p982_p3 }
   0xf   :  { %992 = shalt.err (!%p989_p7)
}
  0x10   :  { %s1042_s11 = smov 256   ;;  %s1043_s12 = smov 16  }
  0x11   :  { %35 = dma.hbm_to_vmem [thread:$0]  %s1160_s1, 1024, %s30_s25, [#allocation5], %s1042_s11, %s1042_s11, %s1043_s12  }
  0x12   :  { %s1044_s15 = smov [#allocation2]   ;;  %s1045_s17 = smov [#allocation6]  }
  0x13   :  { %s20_s16 = sshll.u32 %s1044_s15, 4  ;;  %s43_s18 = sshll.u32 %s1045_s17, 4  ;;  %s21_s16 = int_to_ptr.vmem [resolvable:$true] %s20_s16  ;;  %s44_s18 = int_to_ptr.vmem [resolvable:$true] %s43_s18 }
  0x14   :  { %s993_s21 = scalar_lea.hbm %s1159_s0, 128 }
  0x15   :  { %p994_p8 = scmp.ne.s32.totalorder %s1159_s0, %s993_s21  ;;  %p997_p9 = scmp.lt.u32.totalorder %s993_s21, %s1159_s0 }
  0x17   :  { %p999_p10 = pnand %p997_p9, %p994_p8 }
  0x19   :  { %1002 = shalt.err (!%p999_p10)
}
  0x1a   :  { %s1003_s1 = scalar_lea.vmem %s21_s16, 128  ;;  %p1008_p12 = scmp.lt.s32.totalorder %s21_s16, %s21_s16 }
  0x1b   :  { %p1004_p11 = scmp.ne.s32.totalorder %s21_s16, %s1003_s1  ;;  %p1009_p13 = scmp.lt.s32.totalorder %s1003_s1, %s1003_s1 }
  0x1d   :  { %p1010_p0 = por %p1009_p13, %p1008_p12 }
  0x1f   :  { %p1011_p1 = pnand %p1010_p0, %p1004_p11 }
  0x21   :  { %1014 = shalt.err (!%p1011_p1)
}
  0x22   :  { %23 = dma.hbm_to_vmem [thread:$0]  %s1159_s0, 128, %s21_s16, [#allocation3]  }
  0x23   :  { %s1015_s30 = scalar_lea.hbm %s1162_s3, 8192 }
  0x24   :  { %p1016_p2 = scmp.ne.s32.totalorder %s1162_s3, %s1015_s30  ;;  %p1019_p3 = scmp.lt.u32.totalorder %s1015_s30, %s1162_s3 }
  0x26   :  { %p1021_p4 = pnand %p1019_p3, %p1016_p2 }
  0x28   :  { %1024 = shalt.err (!%p1021_p4)
}
  0x29   :  { %s1025_s14 = scalar_lea.vmem %s44_s18, 8192  ;;  %p1030_p6 = scmp.lt.s32.totalorder %s44_s18, %s44_s18 }
  0x2a   :  { %p1026_p5 = scmp.ne.s32.totalorder %s44_s18, %s1025_s14  ;;  %p1031_p7 = scmp.lt.s32.totalorder %s1025_s14, %s1025_s14 }
  0x2c   :  { %p1032_p8 = por %p1031_p7, %p1030_p6 }
  0x2e   :  { %p1033_p9 = pnand %p1032_p8, %p1026_p5 }
  0x30   :  { %1036 = shalt.err (!%p1033_p9)
}
  0x31   :  { %49 = dma.hbm_to_vmem [thread:$0]  %s1162_s3, 8192, %s44_s18, [#allocation5], %s1042_s11, %s1042_s11, %s1043_s12  }
  0x32   :  { %1037 = dma.done.wait [#allocation3], 128  }
  0x33   :  { %1038 = vsyncadd [#allocation3], 4294967168 }
  0x34   :  { %1039 = dma.done.wait [#allocation5], 9216  }
  0x35   :  { %1040 = vsyncadd [#allocation5], 4294958080  ;;  %v1046_v0 = vmov 0   ;;  %v863_v1 = vld [vmem:[#allocation4 + $0x4] ss:$16 sps:$4 sm:$0xff]   ;;  %v66_v9 = vld [vmem:[#allocation2] sm:$0xff] }
  0x36   :  { %174 = vmatprep.mubr.bf16.mxu0 %v1046_v0  ;;  %215 = vmatprep.mubr.bf16.mxu1 %v1046_v0  ;;  %v865_v2 = vld [vmem:[#allocation4 + $0xc] ss:$16 sps:$4 sm:$0xff]   ;;  %v867_v3 = vld [vmem:[#allocation4] ss:$16 sps:$4 sm:$0xff]   ;;  %v868_v4 = vld [vmem:[#allocation4 + $0x8] ss:$16 sps:$4 sm:$0xff]   ;;  %v67_v12 = vpack.c.bf16 %v66_v9, %v66_v9 }
  0x37   :  { %142 = vmatprep.subr.bf16.mxu0 %v863_v1  ;;  %183 = vmatprep.subr.bf16.mxu1 %v865_v2  ;;  %v869_v5 = vld [vmem:[#allocation4 + $0x24] ss:$16 sps:$4 sm:$0xff]   ;;  %v871_v6 = vld [vmem:[#allocation4 + $0x2c] ss:$16 sps:$4 sm:$0xff]   ;;  %v873_v7 = vld [vmem:[#allocation4 + $0x20] ss:$16 sps:$4 sm:$0xff]  }
  0x38   :  { %143 = vmatpush1.bf16.msra.mxu0 %v867_v3  ;;  %184 = vmatpush1.bf16.msra.mxu1 %v868_v4  ;;  %v874_v8 = vld [vmem:[#allocation4 + $0x28] ss:$16 sps:$4 sm:$0xff]   ;;  %v875_v10 = vld [vmem:[#allocation6] ss:$16 sps:$4 sm:$0xff]   ;;  %v877_v11 = vld [vmem:[#allocation6 + $0x4] ss:$16 sps:$4 sm:$0xff]  }
  0x39   :  { %144 = vmatprep.subr.bf16.mxu0 %v869_v5  ;;  %185 = vmatprep.subr.bf16.mxu1 %v871_v6  ;;  %v878_v13 = vld [vmem:[#allocation6 + $0x8] ss:$16 sps:$4 sm:$0xff]   ;;  %vm138_vm0 = vcmask 261120   ;;  %v880_v14 = vld [vmem:[#allocation6 + $0xc] ss:$16 sps:$4 sm:$0xff]   ;;  %vm773_vm2 = vcmask 15360  }
  0x3a   :  { %v883_v15 = vld [vmem:[#allocation6 + $0x24] ss:$16 sps:$4 sm:$0xff]   ;;  %v886_v16 = vld [vmem:[#allocation6 + $0x2c] ss:$16 sps:$4 sm:$0xff]   ;;  %v881_v17 = vld [vmem:[#allocation6 + $0x20] ss:$16 sps:$4 sm:$0xff]  }
  0x3b   :  { %v884_v18 = vld [vmem:[#allocation6 + $0x28] ss:$16 sps:$4 sm:$0xff]   ;;  %v889_v19 = vld [vmem:[#allocation6 + $0x44] ss:$16 sps:$4 sm:$0xff]   ;;  %v892_v20 = vld [vmem:[#allocation6 + $0x4c] ss:$16 sps:$4 sm:$0xff]  }
  0x3c   :  { %145 = vmatpush1.bf16.msra.mxu0 %v873_v7  ;;  %186 = vmatpush1.bf16.msra.mxu1 %v874_v8  ;;  %v887_v21 = vld [vmem:[#allocation6 + $0x40] ss:$16 sps:$4 sm:$0xff]   ;;  %v890_v22 = vld [vmem:[#allocation6 + $0x48] ss:$16 sps:$4 sm:$0xff]   ;;  %v895_v23 = vld [vmem:[#allocation6 + $0x64] ss:$16 sps:$4 sm:$0xff]  }
  0x3d   :  { %436 = vmatprep.subr.bf16.mxu0 %v877_v11  ;;  %683 = vmatprep.subr.bf16.mxu1 %v880_v14  ;;  %v898_v24 = vld [vmem:[#allocation6 + $0x6c] ss:$16 sps:$4 sm:$0xff]   ;;  %v893_v25 = vld [vmem:[#allocation6 + $0x60] ss:$16 sps:$4 sm:$0xff]   ;;  %v896_v26 = vld [vmem:[#allocation6 + $0x68] ss:$16 sps:$4 sm:$0xff]   ;;  %v78_v11 = vlaneseq }
  0x3e   :  { %v901_v27 = vld [vmem:[#allocation6 + $0x84] ss:$16 sps:$4 sm:$0xff]   ;;  %v904_v28 = vld [vmem:[#allocation6 + $0x8c] ss:$16 sps:$4 sm:$0xff]   ;;  %v899_v29 = vld [vmem:[#allocation6 + $0x80] ss:$16 sps:$4 sm:$0xff]  }
  0x3f   :  { %789 = vmatmul.mubr.msk.bf16.vlgmr.msra.gmra.mrb[0].mxu0 %vm138_vm0, %v67_v12  ;;  %790 = vmatmul.mubr.msk.bf16.vlgmr.msra.gmra.mrb[0].mxu1 %vm138_vm0, %v67_v12  ;;  %v902_v30 = vld [vmem:[#allocation6 + $0x88] ss:$16 sps:$4 sm:$0xff]   ;;  %v907_v31 = vld [vmem:[#allocation6 + $0xa4] ss:$16 sps:$4 sm:$0xff]   ;;  %v910_v32 = vld [vmem:[#allocation6 + $0xac] ss:$16 sps:$4 sm:$0xff]  }
  0x40   :  { %437 = vmatpush1.bf16.msra.mxu0 %v875_v10  ;;  %684 = vmatpush1.bf16.msra.mxu1 %v878_v13  ;;  %v905_v33 = vld [vmem:[#allocation6 + $0xa0] ss:$16 sps:$4 sm:$0xff]   ;;  %v908_v34 = vld [vmem:[#allocation6 + $0xa8] ss:$16 sps:$4 sm:$0xff]   ;;  %v913_v35 = vld [vmem:[#allocation6 + $0xc4] ss:$16 sps:$4 sm:$0xff]  }
  0x41   :  { %438 = vmatprep.subr.bf16.mxu0 %v883_v15  ;;  %685 = vmatprep.subr.bf16.mxu1 %v886_v16  ;;  %v916_v36 = vld [vmem:[#allocation6 + $0xcc] ss:$16 sps:$4 sm:$0xff]   ;;  %v911_v37 = vld [vmem:[#allocation6 + $0xc0] ss:$16 sps:$4 sm:$0xff]   ;;  %v914_v38 = vld [vmem:[#allocation6 + $0xc8] ss:$16 sps:$4 sm:$0xff]  }
  0x42   :  { %v919_v39 = vld [vmem:[#allocation6 + $0xe4] ss:$16 sps:$4 sm:$0xff]   ;;  %v922_v40 = vld [vmem:[#allocation6 + $0xec] ss:$16 sps:$4 sm:$0xff]   ;;  %v917_v41 = vld [vmem:[#allocation6 + $0xe0] ss:$16 sps:$4 sm:$0xff]  }
  0x43   :  { %v920_v42 = vld [vmem:[#allocation6 + $0xe8] ss:$16 sps:$4 sm:$0xff]   ;;  %v925_v43 = vld [vmem:[#allocation6 + $0x104] ss:$16 sps:$4 sm:$0xff]   ;;  %v928_v44 = vld [vmem:[#allocation6 + $0x10c] ss:$16 sps:$4 sm:$0xff]  }
  0x44   :  { %439 = vmatpush1.bf16.msra.mxu0 %v881_v17  ;;  %686 = vmatpush1.bf16.msra.mxu1 %v884_v18  ;;  %v923_v45 = vld [vmem:[#allocation6 + $0x100] ss:$16 sps:$4 sm:$0xff]   ;;  %v926_v46 = vld [vmem:[#allocation6 + $0x108] ss:$16 sps:$4 sm:$0xff]   ;;  %v931_v47 = vld [vmem:[#allocation6 + $0x124] ss:$16 sps:$4 sm:$0xff]  }
  0x45   :  { %440 = vmatprep.subr.bf16.mxu0 %v889_v19  ;;  %687 = vmatprep.subr.bf16.mxu1 %v892_v20  ;;  %v934_v48 = vld [vmem:[#allocation6 + $0x12c] ss:$16 sps:$4 sm:$0xff]   ;;  %v929_v49 = vld [vmem:[#allocation6 + $0x120] ss:$16 sps:$4 sm:$0xff]   ;;  %v932_v50 = vld [vmem:[#allocation6 + $0x128] ss:$16 sps:$4 sm:$0xff]  }
  0x46   :  { %v937_v51 = vld [vmem:[#allocation6 + $0x144] ss:$16 sps:$4 sm:$0xff]   ;;  %v940_v52 = vld [vmem:[#allocation6 + $0x14c] ss:$16 sps:$4 sm:$0xff]   ;;  %v935_v53 = vld [vmem:[#allocation6 + $0x140] ss:$16 sps:$4 sm:$0xff]  }
  0x47   :  { %v938_v54 = vld [vmem:[#allocation6 + $0x148] ss:$16 sps:$4 sm:$0xff]   ;;  %v943_v55 = vld [vmem:[#allocation6 + $0x164] ss:$16 sps:$4 sm:$0xff]   ;;  %v946_v56 = vld [vmem:[#allocation6 + $0x16c] ss:$16 sps:$4 sm:$0xff]  }
  0x48   :  { %441 = vmatpush1.bf16.msra.mxu0 %v887_v21  ;;  %688 = vmatpush1.bf16.msra.mxu1 %v890_v22  ;;  %v941_v57 = vld [vmem:[#allocation6 + $0x160] ss:$16 sps:$4 sm:$0xff]   ;;  %v944_v58 = vld [vmem:[#allocation6 + $0x168] ss:$16 sps:$4 sm:$0xff]   ;;  %v949_v59 = vld [vmem:[#allocation6 + $0x184] ss:$16 sps:$4 sm:$0xff]  }
  0x49   :  { %442 = vmatprep.subr.bf16.mxu0 %v895_v23  ;;  %689 = vmatprep.subr.bf16.mxu1 %v898_v24  ;;  %v952_v60 = vld [vmem:[#allocation6 + $0x18c] ss:$16 sps:$4 sm:$0xff]   ;;  %v947_v61 = vld [vmem:[#allocation6 + $0x180] ss:$16 sps:$4 sm:$0xff]   ;;  %v950_v62 = vld [vmem:[#allocation6 + $0x188] ss:$16 sps:$4 sm:$0xff]  }
  0x4a   :  { %v955_v63 = vld [vmem:[#allocation6 + $0x1a4] ss:$16 sps:$4 sm:$0xff]   ;;  %v958_v0 = vld [vmem:[#allocation6 + $0x1ac] ss:$16 sps:$4 sm:$0xff]   ;;  %v953_v1 = vld [vmem:[#allocation6 + $0x1a0] ss:$16 sps:$4 sm:$0xff]  }
  0x4b   :  { %v956_v2 = vld [vmem:[#allocation6 + $0x1a8] ss:$16 sps:$4 sm:$0xff]   ;;  %v961_v3 = vld [vmem:[#allocation6 + $0x1c4] ss:$16 sps:$4 sm:$0xff]   ;;  %v964_v4 = vld [vmem:[#allocation6 + $0x1cc] ss:$16 sps:$4 sm:$0xff]  }
  0x4c   :  { %443 = vmatpush1.bf16.msra.mxu0 %v893_v25  ;;  %690 = vmatpush1.bf16.msra.mxu1 %v896_v26  ;;  %v959_v5 = vld [vmem:[#allocation6 + $0x1c0] ss:$16 sps:$4 sm:$0xff]   ;;  %v962_v6 = vld [vmem:[#allocation6 + $0x1c8] ss:$16 sps:$4 sm:$0xff]   ;;  %v967_v7 = vld [vmem:[#allocation6 + $0x1e4] ss:$16 sps:$4 sm:$0xff]  }
  0x4d   :  { %444 = vmatprep.subr.bf16.mxu0 %v901_v27  ;;  %691 = vmatprep.subr.bf16.mxu1 %v904_v28  ;;  %v970_v8 = vld [vmem:[#allocation6 + $0x1ec] ss:$16 sps:$4 sm:$0xff]   ;;  %v965_v9 = vld [vmem:[#allocation6 + $0x1e0] ss:$16 sps:$4 sm:$0xff]   ;;  %v968_v10 = vld [vmem:[#allocation6 + $0x1e8] ss:$16 sps:$4 sm:$0xff]  }
  0x4e   :  { %v79_v12 = vshrl.u32 %v78_v11, 7  ;;  %v76_v15 = vld [vmem:[%s1161_s2] sm:$0xf] }
  0x50   :  { %445 = vmatpush1.bf16.msra.mxu0 %v899_v29  ;;  %692 = vmatpush1.bf16.msra.mxu1 %v902_v30  ;;  %v1130_v13 = vsub.s32 0, %v79_v12  ;;  %v88_v14 = vsub.s32 2, %v79_v12  ;;  %v84_v16 = vsub.s32 1, %v79_v12  ;;  %v92_v17 = vsub.s32 3, %v79_v12 }
  0x51   :  { %446 = vmatprep.subr.bf16.mxu0 %v907_v31  ;;  %693 = vmatprep.subr.bf16.mxu1 %v910_v32 }
  0x52   :  { %v81_v18 = vrot.slane %v76_v15, %v1130_v13  ;;  %v89_v19 = vrot.slane %v76_v15, %v88_v14  ;;  %v85_v20 = vrot.slane %v76_v15, %v84_v16  ;;  %v93_v21 = vrot.slane %v76_v15, %v92_v17  ;;  %v856_v15 = vld [vmem:[%s1165_s6] ss:$0 sm:$0xff] }
  0x54   :  { %447 = vmatpush1.bf16.msra.mxu0 %v905_v33  ;;  %694 = vmatpush1.bf16.msra.mxu1 %v908_v34 }
  0x55   :  { %448 = vmatprep.subr.bf16.mxu0 %v913_v35  ;;  %695 = vmatprep.subr.bf16.mxu1 %v916_v36 }
  0x58   :  { %449 = vmatpush1.bf16.msra.mxu0 %v911_v37  ;;  %696 = vmatpush1.bf16.msra.mxu1 %v914_v38 }
  0x59   :  { %450 = vmatprep.subr.bf16.mxu0 %v919_v39  ;;  %697 = vmatprep.subr.bf16.mxu1 %v922_v40 }
  0x5c   :  { %451 = vmatpush1.bf16.msra.mxu0 %v917_v41  ;;  %698 = vmatpush1.bf16.msra.mxu1 %v920_v42  ;;  %v264_v42 = vld [vmem:[%s1163_s4] sm:$0x3] }
  0x5d   :  { %452 = vmatprep.subr.bf16.mxu0 %v925_v43  ;;  %699 = vmatprep.subr.bf16.mxu1 %v928_v44  ;;  %v511_v43 = vld [vmem:[%s1163_s4 + $0x2] sm:$0x3]  ;;  %v269_v44 = vrot.slane %v264_v42, %v1130_v13 }
  0x60   :  { %453 = vmatpush1.bf16.msra.mxu0 %v923_v45  ;;  %700 = vmatpush1.bf16.msra.mxu1 %v926_v46  ;;  %v516_v45 = vrot.slane %v511_v43, %v1130_v13  ;;  %v855_v46 = vld [vmem:[%s1164_s5 + $0x1] ss:$2 sm:$0x3] }
  0x61   :  { %454 = vmatprep.subr.bf16.mxu0 %v931_v47  ;;  %701 = vmatprep.subr.bf16.mxu1 %v934_v48  ;;  %v273_v47 = vrot.slane %v264_v42, %v84_v16  ;;  %v520_v48 = vrot.slane %v511_v43, %v84_v16 }
  0x64   :  { %455 = vmatpush1.bf16.msra.mxu0 %v929_v49  ;;  %702 = vmatpush1.bf16.msra.mxu1 %v932_v50  ;;  %v726_v49 = vld [vmem:[%s1164_s5] ss:$2 sm:$0x3] }
  0x65   :  { %456 = vmatprep.subr.bf16.mxu0 %v937_v51  ;;  %703 = vmatprep.subr.bf16.mxu1 %v940_v52 }
  0x68   :  { %457 = vmatpush1.bf16.msra.mxu0 %v935_v53  ;;  %704 = vmatpush1.bf16.msra.mxu1 %v938_v54  ;;  %v749_v54 = vrot.slane %v855_v46, %v1130_v13 }
  0x69   :  { %458 = vmatprep.subr.bf16.mxu0 %v943_v55  ;;  %705 = vmatprep.subr.bf16.mxu1 %v946_v56 }
  0x6c   :  { %459 = vmatpush1.bf16.msra.mxu0 %v941_v57  ;;  %706 = vmatpush1.bf16.msra.mxu1 %v944_v58  ;;  %v731_v57 = vrot.slane %v726_v49, %v1130_v13  ;;  %v762_v13 = vand.u32 127, %v78_v11 }
  0x6d   :  { %460 = vmatprep.subr.bf16.mxu0 %v949_v59  ;;  %707 = vmatprep.subr.bf16.mxu1 %v952_v60  ;;  %v753_v60 = vrot.slane %v855_v46, %v84_v16 }
  0x6e   :  { %vm763_vm1 = vcmp.eq.s32.totalorder %v762_v13, 0 }
  0x70   :  { %461 = vmatpush1.bf16.msra.mxu0 %v947_v61  ;;  %708 = vmatpush1.bf16.msra.mxu1 %v950_v62 }
  0x71   :  { %462 = vmatprep.subr.bf16.mxu0 %v955_v63  ;;  %709 = vmatprep.subr.bf16.mxu1 %v958_v0  ;;  %v735_v63 = vrot.slane %v726_v49, %v84_v16 }
  0x74   :  { %463 = vmatpush1.bf16.msra.mxu0 %v953_v1  ;;  %710 = vmatpush1.bf16.msra.mxu1 %v956_v2 }
  0x75   :  { %464 = vmatprep.subr.bf16.mxu0 %v961_v3  ;;  %711 = vmatprep.subr.bf16.mxu1 %v964_v4 }
  0x78   :  { %465 = vmatpush1.bf16.msra.mxu0 %v959_v5  ;;  %712 = vmatpush1.bf16.msra.mxu1 %v962_v6 }
  0x79   :  { %466 = vmatprep.subr.bf16.mxu0 %v967_v7  ;;  %713 = vmatprep.subr.bf16.mxu1 %v970_v8 }
  0x7c   :  { %467 = vmatpush1.bf16.msra.mxu0 %v965_v9  ;;  %714 = vmatpush1.bf16.msra.mxu1 %v968_v10 }
 0x112   :  { %v176_v22 = vpop.f32.mrb[0].mxu0  ;;  %v217_v23 = vpop.f32.mrb[0].mxu1 }
 0x113   :  { %v177_v24 = vadd.f32 %v176_v22, %v81_v18  ;;  %v218_v25 = vadd.f32 %v217_v23, %v89_v19  ;;  %v178_v26 = vpop.f32.mrb[1].mxu0  ;;  %v219_v27 = vpop.f32.mrb[1].mxu1 }
 0x114   :  { %v179_v28 = vadd.f32 %v178_v26, %v85_v20  ;;  %v220_v29 = vadd.f32 %v219_v27, %v93_v21  ;;  %v180_v30 = vpop.f32.mrb[2].mxu0  ;;  %v221_v31 = vpop.f32.mrb[2].mxu1 }
 0x115   :  { %v224_v32 = vmax.f32 %v177_v24, 0.0  ;;  %v226_v33 = vmax.f32 %v218_v25, 0.0  ;;  %v181_v34 = vpop.f32.mrb[3].mxu0  ;;  %v222_v35 = vpop.f32.mrb[3].mxu1 }
 0x116   :  { %v225_v36 = vmax.f32 %v179_v28, 0.0  ;;  %v227_v37 = vmax.f32 %v220_v29, 0.0 }
 0x117   :  { %v230_v38 = vpack.c.bf16 %v226_v33, %v226_v33  ;;  %v228_v41 = vpack.c.bf16 %v224_v32, %v224_v32 }
 0x118   :  { %v229_v39 = vpack.c.bf16 %v225_v36, %v225_v36  ;;  %v231_v40 = vpack.c.bf16 %v227_v37, %v227_v37 }
 0x11a   :  { %468 = vmatprep.mubr.bf16.mxu0 %v229_v39  ;;  %715 = vmatprep.mubr.bf16.mxu1 %v231_v40 }
 0x11b   :  { %469 = vmatmul.mubr.bf16.vlgmr.msra.gmra.mrb[4].mxu0 %v228_v41  ;;  %716 = vmatmul.mubr.bf16.vlgmr.msra.gmra.mrb[4].mxu1 %v230_v38 }
 0x1ee   :  { %v470_v50 = vpop.f32.mrb[4].mxu0  ;;  %v717_v51 = vpop.f32.mrb[4].mxu1 }
 0x1ef   :  { %v471_v52 = vadd.f32 %v470_v50, %v269_v44  ;;  %v718_v53 = vadd.f32 %v717_v51, %v516_v45  ;;  %v472_v55 = vpop.f32.mrb[5].mxu0  ;;  %v719_v56 = vpop.f32.mrb[5].mxu1 }
 0x1f0   :  { %v473_v58 = vadd.f32 %v472_v55, %v273_v47  ;;  %v720_v59 = vadd.f32 %v719_v56, %v520_v48  ;;  %v474_v61 = vpop.f32.mrb[6].mxu0  ;;  %v721_v62 = vpop.f32.mrb[6].mxu1 }
 0x1f1   :  { %v477_v0 = vmax.f32 %v471_v52, 0.0  ;;  %v724_v1 = vmax.f32 %v718_v53, 0.0  ;;  %v475_v2 = vpop.f32.mrb[7].mxu0  ;;  %v722_v3 = vpop.f32.mrb[7].mxu1 }
 0x1f2   :  { %v478_v4 = vmax.f32 %v473_v58, 0.0  ;;  %v725_v5 = vmax.f32 %v720_v59, 0.0 }
 0x1f3   :  { %v756_v6 = vmul.f32 %v749_v54, %v724_v1  ;;  %v738_v7 = vmul.f32 %v731_v57, %v477_v0 }
 0x1f4   :  { %v757_v8 = vmul.f32 %v753_v60, %v725_v5  ;;  %v739_v9 = vmul.f32 %v735_v63, %v478_v4 }
 0x1f6   :  { %v740_v10 = vadd.f32 %v739_v9, %v738_v7  ;;  %v758_v12 = vadd.f32 %v757_v8, %v756_v6 }
 0x1f8   :  { %741 = vadd.xlane.f32.xlu0 %v740_v10 }
 0x1fc   :  { %759 = vadd.xlane.f32.xlu0 %v758_v12 }
 0x285   :  { %v742_v14 = vpop.xlane.xlu0 %741 }
 0x289   :  { %v760_v16 = vpop.xlane.xlu0 %759 }
 0x28a   :  { %v764_v17 = vsel %vm763_vm1, %v742_v14, %v760_v16 }
 0x28b   :  { %v772_v18 = vadd.f32 %v856_v15, %v764_v17 }
 0x28d   :  { %774 = vst.msk [vmem:[%s1166_s7] sm:$0xff] %vm773_vm2, %v772_v18 }
 0x28e   :  { %779 = vsyncpa [#allocation3], 1 }
 0x28f   :  { %780 = vsyncpa [#allocation5], 1 }

</bundles_post_ra>
